<compile_context>
chip_gen: v5e
topology: v5e:2x2
jax: 0.10.0
libtpu: 0.0.40
codegen_flags: <defaults>
</compile_context>

<pallas_src>
import functools

import jax
import jax.numpy as jnp
from jax.experimental import pallas as pl
from jax.experimental.pallas import tpu as pltpu

LANE = 128                       # padded feature width (128-lane vreg)
_ROW_TILE = 1024                 # target rows per grid step for row-wise kernels
_EPS = 1e-5
ACT_DTYPE = jnp.bfloat16         # inter-kernel activation dtype in HBM


# ----------------------------- small helpers --------------------------------

def _round_up(x, m):
    return ((x + m - 1) // m) * m


_VMEM_LIMIT = None


def _vmem_limit_bytes():
    """~3/4 of per-core VMEM: ~48 MiB on v7x (64 MiB VMEM), 96 MiB on v5e/v6e."""
    global _VMEM_LIMIT
    if _VMEM_LIMIT is None:
        try:
            cap = pltpu.get_tpu_info().vmem_capacity_bytes
        except Exception:
            cap = 64 * 1024 * 1024
        _VMEM_LIMIT = int(min((cap * 3) // 4, 96 * 1024 * 1024))
    return _VMEM_LIMIT


def _cparams(*semantics):
    return pltpu.CompilerParams(dimension_semantics=semantics,
                                vmem_limit_bytes=_vmem_limit_bytes())


def _row_tiling(m_real):
    """Large row tiles; always >= 2 grid steps (when possible) so both v7x TCs get work."""
    half = _round_up(max(-(-m_real // 2), 1), 8)
    tm = max(8, min(_ROW_TILE, half))
    m_pad = _round_up(m_real, tm)
    return tm, m_pad


def _masked_ln(x, g, b, d_actual):
    """LayerNorm over the first d_actual features of a zero-padded last dim (two-pass var).

    Padded columns of x are zero and gamma/beta are zero-padded, so padded output
    columns stay zero while real columns match an unpadded LayerNorm.
    """
    lane = jax.lax.broadcasted_iota(jnp.int32, x.shape, 1)
    mask = lane < d_actual
    inv_d = 1.0 / d_actual
    mu = jnp.sum(x, axis=-1, keepdims=True) * inv_d
    diff = jnp.where(mask, x - mu, 0.0)
    var = jnp.sum(diff * diff, axis=-1, keepdims=True) * inv_d
    return diff * jax.lax.rsqrt(var + _EPS) * g + b


# ----------------------------- Pallas kernels ------------------------------

def _linear_kernel(x_ref, w_ref, b_ref, o_ref, *, activation):
    y = jnp.dot(x_ref[...].astype(jnp.bfloat16), w_ref[...],
                preferred_element_type=jnp.float32) + b_ref[...]
    if activation == "gelu":
        # TODO(synk): HF Wav2Vec2 uses the exact erf GELU; tanh approximation used here.
        y = jax.nn.gelu(y, approximate=True)
    o_ref[...] = y.astype(o_ref.dtype)


def _featproj_kernel(x_ref, g1_ref, b1_ref, w_ref, b_ref, g2_ref, b2_ref, o_ref,
                     *, d_in, d_out):
    """Feature projection LayerNorm + Linear, fused with the encoder input LayerNorm."""
    xn = _masked_ln(x_ref[...].astype(jnp.float32), g1_ref[...], b1_ref[...], d_in)
    y = jnp.dot(xn.astype(jnp.bfloat16), w_ref[...],
                preferred_element_type=jnp.float32) + b_ref[...]
    # TODO(synk): grouped positional conv embedding (weight-normed Conv1d + GELU) omitted;
    # it belongs between the projection and the encoder LayerNorm below.
    o_ref[...] = _masked_ln(y, g2_ref[...], b2_ref[...], d_out).astype(o_ref.dtype)


def _ffn_kernel(h_ref, w1_ref, b1_ref, w2_ref, b2_ref, g_ref, be_ref, o_ref, *, d_model):
    """Fused FFN: x@W1+b1 -> GELU -> @W2+b2 -> +residual -> LayerNorm."""
    h = h_ref[...]
    t = jnp.dot(h, w1_ref[...], preferred_element_type=jnp.float32) + b1_ref[...]
    t = jax.nn.gelu(t, approximate=True)
    y = jnp.dot(t.astype(jnp.bfloat16), w2_ref[...],
                preferred_element_type=jnp.float32) + b2_ref[...]
    x = h.astype(jnp.float32) + y
    o_ref[...] = _masked_ln(x, g_ref[...], be_ref[...], d_model).astype(o_ref.dtype)


def _attention_kernel(q_ref, k_ref, v_ref, r_ref, ow_ref, ob_ref, g_ref, be_ref,
                      o_ref, m_sc, l_sc, acc_sc, *,
                      scale, t_actual, tk, nheads, dh, d_model):
    """Flash-style attention over real heads only, fused with o-proj + residual + LN.

    Grid is (batch, kv_tile).  q/k/v come straight from the (B, T, 3*LANE) QKV buffer
    via lane-offset BlockSpecs; the only HBM store is a dense (T, LANE) block.
    """
    kv = pl.program_id(1)

    @pl.when(kv == 0)
    def _():
        m_sc[...] = jnp.full(m_sc.shape, -jnp.inf, jnp.float32)
        l_sc[...] = jnp.zeros(l_sc.shape, jnp.float32)
        acc_sc[...] = jnp.zeros(acc_sc.shape, jnp.float32)

    q = q_ref[0]                       # (T_pad, LANE) bf16
    k = k_ref[0]                       # (tk, LANE)    bf16
    v = v_ref[0]                       # (tk, LANE)    bf16
    t_pad = q.shape[0]

    key_idx = kv * tk + jax.lax.broadcasted_iota(jnp.int32, (t_pad, tk), 1)
    key_valid = key_idx < t_actual     # mask zero-padded key frames

    for h in range(nheads):            # statically unrolled over the *real* heads
        cs = slice(h * dh, (h + 1) * dh)
        s = jax.lax.dot_general(q[:, cs], k[:, cs], (((1,), (1,)), ((), ())),
                                preferred_element_type=jnp.float32) * scale
        s = jnp.where(key_valid, s, -1e30)
        m_prev = m_sc[:, h:h + 1]
        m_new = jnp.maximum(m_prev, jnp.max(s, axis=-1, keepdims=True))
        alpha = jnp.exp(m_prev - m_new)
        p = jnp.exp(s - m_new)
        l_sc[:, h:h + 1] = alpha * l_sc[:, h:h + 1] + jnp.sum(p, axis=-1, keepdims=True)
        acc_sc[:, cs] = alpha * acc_sc[:, cs] + jnp.dot(
            p.astype(jnp.bfloat16), v[:, cs], preferred_element_type=jnp.float32)
        m_sc[:, h:h + 1] = m_new

    @pl.when(kv == pl.num_programs(1) - 1)
    def _():
        for h in range(nheads):
            cs = slice(h * dh, (h + 1) * dh)
            acc_sc[:, cs] = acc_sc[:, cs] * pl.reciprocal(l_sc[:, h:h + 1], approx=True)
        attn = acc_sc[...]                                   # (T_pad, nheads*dh)
        y = jnp.dot(attn.astype(jnp.bfloat16), ow_ref[:nheads * dh, :],
                    preferred_element_type=jnp.float32) + ob_ref[...]
        x = r_ref[0].astype(jnp.float32) + y
        o_ref[0] = _masked_ln(x, g_ref[...], be_ref[...], d_model).astype(o_ref.dtype)


def _conv_kernel(x2_ref, w_ref, gg_ref, gb_ref, o_ref, *, groups, t_out, sc, use_gn):
    """Strided Conv1d as `groups` shifted un-strided matmuls (+GroupNorm) + GELU."""
    x2 = x2_ref[0]                                          # (T2, sc) bf16
    acc = jnp.zeros((t_out, LANE), jnp.float32)
    for q in range(groups):
        acc = acc + jnp.dot(x2[q:q + t_out, :], w_ref[q * sc:(q + 1) * sc, :],
                            preferred_element_type=jnp.float32)
    if use_gn:
        # GroupNorm with num_groups == num_channels: per-channel norm over time.
        mu = jnp.mean(acc, axis=0, keepdims=True)
        var = jnp.mean((acc - mu) * (acc - mu), axis=0, keepdims=True)
        acc = (acc - mu) * jax.lax.rsqrt(var + _EPS) * gg_ref[...] + gb_ref[...]
    acc = jax.nn.gelu(acc, approximate=True)
    o_ref[0] = acc.astype(o_ref.dtype)


# ----------------------------- Pallas wrappers ------------------------------

def _row_tiled_call(kernel, operands, tiled, n_out, m_real, out_dtype=ACT_DTYPE):
    """Row-tiled pallas_call; tiled operands/output share the (padded) row dimension."""
    tm, m_pad = _row_tiling(m_real)
    ops, in_specs = [], []
    for a, t in zip(operands, tiled):
        if t:
            if a.shape[0] != m_pad:
                a = jnp.pad(a, ((0, m_pad - a.shape[0]), (0, 0)))
            in_specs.append(pl.BlockSpec((tm, a.shape[1]), lambda i: (i, 0)))
        else:
            in_specs.append(pl.BlockSpec(a.shape, lambda i: (0, 0)))   # resident
        ops.append(a)
    out = pl.pallas_call(
        kernel,
        out_shape=jax.ShapeDtypeStruct((m_pad, n_out), out_dtype),
        grid=(m_pad // tm,),
        in_specs=in_specs,
        out_specs=pl.BlockSpec((tm, n_out), lambda i: (i, 0)),
        compiler_params=_cparams("parallel"),
    )(*ops)
    return out[:m_real] if m_pad != m_real else out


def pallas_linear(x, w, b, activation=None, out_dtype=ACT_DTYPE):
    m, n = x.shape[0], w.shape[1]
    kern = functools.partial(_linear_kernel, activation=activation)
    return _row_tiled_call(kern, [x, w, b.reshape(1, n)],
                           [True, False, False], n, m, out_dtype)


def pallas_featproj(x, g1, b1, w, b, g2, b2, d_in, d_out):
    m, n = x.shape[0], w.shape[1]
    kern = functools.partial(_featproj_kernel, d_in=d_in, d_out=d_out)
    return _row_tiled_call(
        kern,
        [x, g1.reshape(1, -1), b1.reshape(1, -1), w, b.reshape(1, n),
         g2.reshape(1, n), b2.reshape(1, n)],
        [True] + [False] * 6, n, m)


def pallas_ffn(h, lp, hidden):
    m = h.shape[0]
    kern = functools.partial(_ffn_kernel, d_model=hidden)
    return _row_tiled_call(
        kern,
        [h, lp["ff1_w"], lp["ff1_b"].reshape(1, -1), lp["ff2_w"], lp["ff2_b"].reshape(1, -1),
         lp["ln2_g"].reshape(1, -1), lp["ln2_b"].reshape(1, -1)],
        [True] + [False] * 6, LANE, m)


def pallas_attention_block(qkv3, h3, lp, *, t_actual, tk, nheads, dh, hidden):
    """qkv3: (B, T_pad, 3*LANE), h3: (B, T_pad, LANE) -> new hidden (B, T_pad, LANE)."""
    b, t_pad, _ = qkv3.shape
    n_kv = t_pad // tk                  # T_pad is a multiple of tk -> no fully-masked tiles
    scale = 1.0 / (dh ** 0.5)
    kern = functools.partial(_attention_kernel, scale=scale, t_actual=t_actual,
                             tk=tk, nheads=nheads, dh=dh, d_model=hidden)
    q_spec = pl.BlockSpec((1, t_pad, LANE), lambda bb, j: (bb, 0, 0))
    k_spec = pl.BlockSpec((1, tk, LANE), lambda bb, j: (bb, j, 1))
    v_spec = pl.BlockSpec((1, tk, LANE), lambda bb, j: (bb, j, 2))
    r_spec = pl.BlockSpec((1, t_pad, LANE), lambda bb, j: (bb, 0, 0))
    w_spec = pl.BlockSpec((LANE, LANE), lambda bb, j: (0, 0))
    v1_spec = pl.BlockSpec((1, LANE), lambda bb, j: (0, 0))
    return pl.pallas_call(
        kern,
        out_shape=jax.ShapeDtypeStruct((b, t_pad, LANE), ACT_DTYPE),
        grid=(b, n_kv),
        in_specs=[q_spec, k_spec, v_spec, r_spec, w_spec, v1_spec, v1_spec, v1_spec],
        out_specs=pl.BlockSpec((1, t_pad, LANE), lambda bb, j: (bb, 0, 0)),
        scratch_shapes=[
            pltpu.VMEM((t_pad, nheads), jnp.float32),        # running max per head
            pltpu.VMEM((t_pad, nheads), jnp.float32),        # running sum per head
            pltpu.VMEM((t_pad, nheads * dh), jnp.float32),   # accumulator
        ],
        compiler_params=_cparams("parallel", "arbitrary"),
    )(qkv3, qkv3, qkv3, h3, lp["o_w"], lp["o_b"].reshape(1, LANE),
      lp["ln1_g"].reshape(1, LANE), lp["ln1_b"].reshape(1, LANE))


def pallas_conv1d(x, w2, k, stride, gn=None):
    """x: (B, T_in, Cin) channel-last; w2: (g*sc_pad, LANE) grouped-strided bf16 weight."""
    b, t_in, cin = x.shape
    t_out = (t_in - k) // stride + 1
    g = -(-k // stride)
    sc = stride * cin
    sc_pad = _round_up(sc, 8)
    need = (t_out + g - 1) * stride                    # halo of (g-1) reshaped rows
    if need > t_in:
        x = jnp.pad(x, ((0, 0), (0, need - t_in), (0, 0)))
    x2 = x[:, :need, :].reshape(b, t_out + g - 1, sc)  # contiguous reshape, no im2col blow-up
    if sc_pad != sc:
        x2 = jnp.pad(x2, ((0, 0), (0, 0), (0, sc_pad - sc)))
    use_gn = gn is not None
    gg = (gn[0] if use_gn else jnp.ones((LANE,), jnp.float32)).reshape(1, LANE)
    gb = (gn[1] if use_gn else jnp.zeros((LANE,), jnp.float32)).reshape(1, LANE)
    t2 = t_out + g - 1
    kern = functools.partial(_conv_kernel, groups=g, t_out=t_out, sc=sc_pad, use_gn=use_gn)
    # TODO(synk): for real 16 kHz waveform lengths, row-tile t_out with a manual halo DMA
    # instead of one grid step per batch element.
    return pl.pallas_call(
        kern,
        out_shape=jax.ShapeDtypeStruct((b, t_out, LANE), ACT_DTYPE),
        grid=(b,),
        in_specs=[pl.BlockSpec((1, t2, sc_pad), lambda i: (i, 0, 0)),
                  pl.BlockSpec(w2.shape, lambda i: (0, 0)),
                  pl.BlockSpec((1, LANE), lambda i: (0, 0)),
                  pl.BlockSpec((1, LANE), lambda i: (0, 0))],
        out_specs=pl.BlockSpec((1, t_out, LANE), lambda i: (i, 0, 0)),
        compiler_params=_cparams("parallel"),
    )(x2.astype(ACT_DTYPE), w2, gg, gb)


# ----------------------------- model glue -----------------------------------

def wav2vec2_for_asr_forward(pp, input_values, labels=None, attention_mask=None):
    """Returns CTC logits of shape (B, T_frames, vocab_size)."""
    # TODO(synk): attention_mask handling for variable-length batched audio omitted.
    # TODO(synk): CTC loss when labels is not None has no clean Pallas equivalent here.
    batch = input_values.shape[0]
    x = input_values.astype(ACT_DTYPE)[:, :, None]          # (B, T, 1) channel-last

    # feature extractor: conv (+ GroupNorm on the first layer) + GELU, fused per layer
    for li, conv in enumerate(pp["convs"]):
        gn = (pp["gn_g"], pp["gn_b"]) if li == 0 else None
        x = pallas_conv1d(x, conv["w"], conv["k"], conv["stride"], gn=gn)

    _, t_frames, _ = x.shape
    hidden = pp["hidden"]
    conv_dim = pp["conv_dim"]
    nheads = pp["num_heads"]
    dh = hidden // nheads

    tk = min(512, _round_up(t_frames, 8))                   # kv tile; T padded only up to it
    t_pad = _round_up(t_frames, tk)
    if t_pad != t_frames:
        x = jnp.pad(x, ((0, 0), (0, t_pad - t_frames), (0, 0)))
    h = x.reshape(batch * t_pad, LANE)

    # feature projection (LN + Linear) fused with the encoder input LayerNorm
    h = pallas_featproj(h, pp["fp_ln_g"], pp["fp_ln_b"], pp["fp_w"], pp["fp_b"],
                        pp["enc_ln_g"], pp["enc_ln_b"], d_in=conv_dim, d_out=hidden)

    # encoder layers: fused QKV matmul -> fused attention/o-proj/residual/LN -> fused FFN
    # Note: zero-padded query frames (t >= t_frames) carry garbage through padded rows;
    # they are sliced off before the CTC head and never reduced across rows.
    for lp in pp["layers"]:
        qkv = pallas_linear(h, lp["qkv_w"], lp["qkv_b"])                 # (M, 3*LANE) bf16
        h3 = pallas_attention_block(
            qkv.reshape(batch, t_pad, 3 * LANE), h.reshape(batch, t_pad, LANE),
            lp, t_actual=t_frames, tk=tk, nheads=nheads, dh=dh, hidden=hidden)
        h = h3.reshape(batch * t_pad, LANE)
        h = pallas_ffn(h, lp, hidden)

    # CTC head
    logits = pallas_linear(h, pp["lm_w"], pp["lm_b"], out_dtype=jnp.float32)
    logits = logits.reshape(batch, t_pad, LANE)[:, :t_frames, :pp["vocab"]]
    return {"logits": logits}


# ----------------------------- parameter init / prep -------------------------

def init_params(key, *, conv_dim=32, hidden=32, ffn=64, num_heads=4,
                num_layers=2, vocab_size=16):
    ks = iter(jax.random.split(key, 128))

    def dense(k_, shape):
        return (0.02 * jax.random.normal(k_, shape)).astype(jnp.float32)

    params = {
        "num_heads": num_heads,
        "convs": [
            {"w": dense(next(ks), (conv_dim, 1, 10)), "stride": 5},
            {"w": dense(next(ks), (conv_dim, conv_dim, 3)), "stride": 2},
        ],
        "gn_g": jnp.ones((conv_dim,), jnp.float32),
        "gn_b": jnp.zeros((conv_dim,), jnp.float32),
        "fp_ln_g": jnp.ones((conv_dim,), jnp.float32),
        "fp_ln_b": jnp.zeros((conv_dim,), jnp.float32),
        "fp_w": dense(next(ks), (conv_dim, hidden)),
        "fp_b": jnp.zeros((hidden,), jnp.float32),
        "enc_ln_g": jnp.ones((hidden,), jnp.float32),
        "enc_ln_b": jnp.zeros((hidden,), jnp.float32),
        "lm_w": dense(next(ks), (hidden, vocab_size)),
        "lm_b": jnp.zeros((vocab_size,), jnp.float32),
        "layers": [],
    }
    for _ in range(num_layers):
        params["layers"].append({
            "q_w": dense(next(ks), (hidden, hidden)), "q_b": jnp.zeros((hidden,), jnp.float32),
            "k_w": dense(next(ks), (hidden, hidden)), "k_b": jnp.zeros((hidden,), jnp.float32),
            "v_w": dense(next(ks), (hidden, hidden)), "v_b": jnp.zeros((hidden,), jnp.float32),
            "o_w": dense(next(ks), (hidden, hidden)), "o_b": jnp.zeros((hidden,), jnp.float32),
            "ln1_g": jnp.ones((hidden,), jnp.float32), "ln1_b": jnp.zeros((hidden,), jnp.float32),
            "ff1_w": dense(next(ks), (hidden, ffn)), "ff1_b": jnp.zeros((ffn,), jnp.float32),
            "ff2_w": dense(next(ks), (ffn, hidden)), "ff2_b": jnp.zeros((hidden,), jnp.float32),
            "ln2_g": jnp.ones((hidden,), jnp.float32), "ln2_b": jnp.zeros((hidden,), jnp.float32),
        })
    return params


def prepare_kernel_params(p):
    """Zero-pad feature dims to LANE; matmul weights -> bf16; conv weights -> grouped-strided."""
    conv_dim = p["fp_ln_g"].shape[0]
    hidden = p["fp_w"].shape[1]
    vocab = p["lm_w"].shape[1]

    def pad_mat(w):
        out = jnp.zeros((LANE, LANE), jnp.float32).at[:w.shape[0], :w.shape[1]].set(w)
        return out.astype(jnp.bfloat16)

    def pad_vec(v):                                       # gamma/beta/bias padded with zeros
        return jnp.pad(v, (0, LANE - v.shape[0])).astype(jnp.float32)

    def prep_conv(w, cin_store, stride):
        cout, cin, k = w.shape
        g = -(-k // stride)
        sc = stride * cin_store
        sc_pad = _round_up(sc, 8)
        wg = jnp.zeros((g, sc_pad, LANE), jnp.float32)
        for q in range(g):
            for r in range(stride):
                j = q * stride + r
                if j < k:
                    wg = wg.at[q, r * cin_store:r * cin_store + cin, :cout].set(w[:, :, j].T)
        return wg.reshape(g * sc_pad, LANE).astype(jnp.bfloat16)

    pp = {
        "num_heads": p["num_heads"], "hidden": hidden, "conv_dim": conv_dim, "vocab": vocab,
        "convs": [
            {"w": prep_conv(p["convs"][0]["w"], 1, p["convs"][0]["stride"]),
             "k": p["convs"][0]["w"].shape[2], "stride": p["convs"][0]["stride"]},
            {"w": prep_conv(p["convs"][1]["w"], LANE, p["convs"][1]["stride"]),
             "k": p["convs"][1]["w"].shape[2], "stride": p["convs"][1]["stride"]},
        ],
        "gn_g": pad_vec(p["gn_g"]), "gn_b": pad_vec(p["gn_b"]),
        "fp_ln_g": pad_vec(p["fp_ln_g"]), "fp_ln_b": pad_vec(p["fp_ln_b"]),
        "fp_w": pad_mat(p["fp_w"]), "fp_b": pad_vec(p["fp_b"]),
        "enc_ln_g": pad_vec(p["enc_ln_g"]), "enc_ln_b": pad_vec(p["enc_ln_b"]),
        "lm_w": pad_mat(p["lm_w"]), "lm_b": pad_vec(p["lm_b"]),
        "layers": [],
    }
    for lp in p["layers"]:
        qkv_w = jnp.concatenate(
            [pad_mat(lp["q_w"]), pad_mat(lp["k_w"]), pad_mat(lp["v_w"])], axis=1)
        qkv_b = jnp.concatenate(
            [pad_vec(lp["q_b"]), pad_vec(lp["k_b"]), pad_vec(lp["v_b"])])
        pp["layers"].append({
            "qkv_w": qkv_w, "qkv_b": qkv_b,
            "o_w": pad_mat(lp["o_w"]), "o_b": pad_vec(lp["o_b"]),
            "ln1_g": pad_vec(lp["ln1_g"]), "ln1_b": pad_vec(lp["ln1_b"]),
            "ff1_w": pad_mat(lp["ff1_w"]), "ff1_b": pad_vec(lp["ff1_b"]),
            "ff2_w": pad_mat(lp["ff2_w"]), "ff2_b": pad_vec(lp["ff2_b"]),
            "ln2_g": pad_vec(lp["ln2_g"]), "ln2_b": pad_vec(lp["ln2_b"]),
        })
    return pp


# ----------------------------- main ------------------------------------------

if __name__ == "__main__":
    key = jax.random.PRNGKey(0)
    k_param, k_input = jax.random.split(key)

    params = init_params(k_param)
    kernel_params = prepare_kernel_params(params)

    B, T = 2, 400                       # raw audio: batch=2, 400 samples
    input_values = jax.random.normal(k_input, (B, T), dtype=jnp.float32)

    out = wav2vec2_for_asr_forward(kernel_params, input_values)
    logits = jax.block_until_ready(out["logits"])

    assert logits.shape == (2, 39, 16), logits.shape
    assert bool(jnp.all(jnp.isfinite(logits)))
    print("KERNEL_OK")
</pallas_src>

<mosaic_0001>
module attributes {stable_mosaic.version = 11 : i64} {
  func.func @_conv_kernel(%arg0: i32, %arg1: memref<1x80x8xbf16, #tpu.memory_space<vmem>>, %arg2: memref<16x128xbf16, #tpu.memory_space<vmem>>, %arg3: memref<1x128xf32, #tpu.memory_space<vmem>>, %arg4: memref<1x128xf32, #tpu.memory_space<vmem>>, %arg5: memref<1x79x128xbf16, #tpu.memory_space<vmem>>) attributes {dimension_semantics = [#tpu.dimension_semantics<parallel>], iteration_bounds = array<i64: 2>, scalar_prefetch = 0 : i64, scratch_operands = 0 : i64, tpu.core_type = #tpu.core_type<tc>, window_params = [{transform_indices = @transform_0, window_bounds = array<i64: 1, 80, 8>}, {pipeline_mode = #tpu.pipeline_mode<synchronous>, transform_indices = @transform_1, window_bounds = array<i64: 16, 128>}, {pipeline_mode = #tpu.pipeline_mode<synchronous>, transform_indices = @transform_2, window_bounds = array<i64: 1, 128>}, {pipeline_mode = #tpu.pipeline_mode<synchronous>, transform_indices = @transform_3, window_bounds = array<i64: 1, 128>}, {transform_indices = @transform_4, window_bounds = array<i64: 1, 79, 128>}]} {
    %c0 = arith.constant 0 : index
    %c0_0 = arith.constant 0 : index
    %c0_1 = arith.constant 0 : index
    %0 = vector.load %arg1[%c0, %c0_0, %c0_1] : memref<1x80x8xbf16, #tpu.memory_space<vmem>>, vector<1x80x8xbf16>
    %1 = vector.shape_cast %0 : vector<1x80x8xbf16> to vector<80x8xbf16>
    %cst = arith.constant 0.000000e+00 : f32
    %2 = vector.broadcast %cst : f32 to vector<79x128xf32>
    %3 = vector.extract_strided_slice %1 {offsets = [0, 0], sizes = [79, 8], strides = [1, 1]} : vector<80x8xbf16> to vector<79x8xbf16>
    %c0_2 = arith.constant 0 : index
    %c0_3 = arith.constant 0 : index
    %4 = vector.load %arg2[%c0_2, %c0_3] : memref<16x128xbf16, #tpu.memory_space<vmem>>, vector<8x128xbf16>
    %cst_4 = arith.constant dense<0.000000e+00> : vector<79x128xf32>
    %5 = tpu.matmul %3, %4, %cst_4 {dimension_numbers = #tpu.dot_dimension_numbers<[1], [0], [0], [1], [0, 0, 1, 1], [], []>} : vector<79x8xbf16>, vector<8x128xbf16>, vector<79x128xf32> -> vector<79x128xf32>
    %6 = arith.addf %2, %5 : vector<79x128xf32>
    %7 = vector.extract_strided_slice %1 {offsets = [1, 0], sizes = [79, 8], strides = [1, 1]} : vector<80x8xbf16> to vector<79x8xbf16>
    %c8 = arith.constant 8 : index
    %c0_5 = arith.constant 0 : index
    %8 = vector.load %arg2[%c8, %c0_5] : memref<16x128xbf16, #tpu.memory_space<vmem>>, vector<8x128xbf16>
    %cst_6 = arith.constant dense<0.000000e+00> : vector<79x128xf32>
    %9 = tpu.matmul %7, %8, %cst_6 {dimension_numbers = #tpu.dot_dimension_numbers<[1], [0], [0], [1], [0, 0, 1, 1], [], []>} : vector<79x8xbf16>, vector<8x128xbf16>, vector<79x128xf32> -> vector<79x128xf32>
    %10 = arith.addf %6, %9 : vector<79x128xf32>
    %cst_7 = arith.constant dense<0.000000e+00> : vector<128xf32>
    %11 = vector.multi_reduction <add>, %10, %cst_7 [0] : vector<79x128xf32> to vector<128xf32>
    %12 = vector.shape_cast %11 : vector<128xf32> to vector<1x128xf32>
    %cst_8 = arith.constant 7.900000e+01 : f32
    %13 = vector.broadcast %cst_8 : f32 to vector<1x128xf32>
    %14 = arith.divf %12, %13 : vector<1x128xf32>
    %15 = vector.broadcast %14 : vector<1x128xf32> to vector<79x128xf32>
    %16 = arith.subf %10, %15 : vector<79x128xf32>
    %17 = vector.broadcast %14 : vector<1x128xf32> to vector<79x128xf32>
    %18 = arith.subf %10, %17 : vector<79x128xf32>
    %19 = arith.mulf %16, %18 : vector<79x128xf32>
    %cst_9 = arith.constant dense<0.000000e+00> : vector<128xf32>
    %20 = vector.multi_reduction <add>, %19, %cst_9 [0] : vector<79x128xf32> to vector<128xf32>
    %21 = vector.shape_cast %20 : vector<128xf32> to vector<1x128xf32>
    %cst_10 = arith.constant 7.900000e+01 : f32
    %22 = vector.broadcast %cst_10 : f32 to vector<1x128xf32>
    %23 = arith.divf %21, %22 : vector<1x128xf32>
    %24 = vector.broadcast %14 : vector<1x128xf32> to vector<79x128xf32>
    %25 = arith.subf %10, %24 : vector<79x128xf32>
    %cst_11 = arith.constant 9.99999974E-6 : f32
    %26 = vector.broadcast %cst_11 : f32 to vector<1x128xf32>
    %27 = arith.addf %23, %26 : vector<1x128xf32>
    %28 = math.rsqrt %27 : vector<1x128xf32>
    %29 = vector.broadcast %28 : vector<1x128xf32> to vector<79x128xf32>
    %30 = arith.mulf %25, %29 : vector<79x128xf32>
    %c0_12 = arith.constant 0 : index
    %c0_13 = arith.constant 0 : index
    %31 = vector.load %arg3[%c0_12, %c0_13] : memref<1x128xf32, #tpu.memory_space<vmem>>, vector<1x128xf32>
    %32 = vector.broadcast %31 : vector<1x128xf32> to vector<79x128xf32>
    %33 = arith.mulf %30, %32 : vector<79x128xf32>
    %c0_14 = arith.constant 0 : index
    %c0_15 = arith.constant 0 : index
    %34 = vector.load %arg4[%c0_14, %c0_15] : memref<1x128xf32, #tpu.memory_space<vmem>>, vector<1x128xf32>
    %35 = vector.broadcast %34 : vector<1x128xf32> to vector<79x128xf32>
    %36 = arith.addf %33, %35 : vector<79x128xf32>
    %37 = arith.mulf %36, %36 : vector<79x128xf32>
    %38 = arith.mulf %36, %37 : vector<79x128xf32>
    %cst_16 = arith.constant 4.471500e-02 : f32
    %39 = vector.broadcast %cst_16 : f32 to vector<79x128xf32>
    %40 = arith.mulf %39, %38 : vector<79x128xf32>
    %41 = arith.addf %36, %40 : vector<79x128xf32>
    %cst_17 = arith.constant 0.797884583 : f32
    %42 = vector.broadcast %cst_17 : f32 to vector<79x128xf32>
    %43 = arith.mulf %42, %41 : vector<79x128xf32>
    %44 = math.tanh %43 : vector<79x128xf32>
    %cst_18 = arith.constant 1.000000e+00 : f32
    %45 = vector.broadcast %cst_18 : f32 to vector<79x128xf32>
    %46 = arith.addf %45, %44 : vector<79x128xf32>
    %cst_19 = arith.constant 5.000000e-01 : f32
    %47 = vector.broadcast %cst_19 : f32 to vector<79x128xf32>
    %48 = arith.mulf %47, %46 : vector<79x128xf32>
    %49 = arith.mulf %36, %48 : vector<79x128xf32>
    %50 = arith.truncf %49 : vector<79x128xf32> to vector<79x128xbf16>
    %c0_20 = arith.constant 0 : index
    %c0_21 = arith.constant 0 : index
    %c0_22 = arith.constant 0 : index
    %51 = vector.load %arg5[%c0_20, %c0_21, %c0_22] : memref<1x79x128xbf16, #tpu.memory_space<vmem>>, vector<1x79x128xbf16>
    %52 = vector.shape_cast %51 : vector<1x79x128xbf16> to vector<79x128xbf16>
    %53 = vector.shape_cast %50 : vector<79x128xbf16> to vector<1x79x128xbf16>
    tpu.vector_store %arg5[%c0_20, %c0_21, %c0_22], %53 {strides = array<i32>} : memref<1x79x128xbf16, #tpu.memory_space<vmem>>, vector<1x79x128xbf16>,
    return
  }
  func.func @transform_0(%arg0: i32) -> (i32, i32, i32) {
    %c0_i32 = arith.constant 0 : i32
    %c0_i32_0 = arith.constant 0 : i32
    %c0_i32_1 = arith.constant 0 : i32
    return %arg0, %c0_i32, %c0_i32_0 : i32, i32, i32
  }
  func.func @transform_1(%arg0: i32) -> (i32, i32) {
    %c0_i32 = arith.constant 0 : i32
    %c0_i32_0 = arith.constant 0 : i32
    %c0_i32_1 = arith.constant 0 : i32
    return %c0_i32, %c0_i32_0 : i32, i32
  }
  func.func @transform_2(%arg0: i32) -> (i32, i32) {
    %c0_i32 = arith.constant 0 : i32
    %c0_i32_0 = arith.constant 0 : i32
    %c0_i32_1 = arith.constant 0 : i32
    return %c0_i32, %c0_i32_0 : i32, i32
  }
  func.func @transform_3(%arg0: i32) -> (i32, i32) {
    %c0_i32 = arith.constant 0 : i32
    %c0_i32_0 = arith.constant 0 : i32
    %c0_i32_1 = arith.constant 0 : i32
    return %c0_i32, %c0_i32_0 : i32, i32
  }
  func.func @transform_4(%arg0: i32) -> (i32, i32, i32) {
    %c0_i32 = arith.constant 0 : i32
    %c0_i32_0 = arith.constant 0 : i32
    %c0_i32_1 = arith.constant 0 : i32
    return %arg0, %c0_i32, %c0_i32_0 : i32, i32, i32
  }
}

</mosaic_0001>

<bundles_post_ra>
// kernel: tpu_custom_call.1
= control target key start
LH: loop header
LB: loop body
LE: loop exit
PB: predicated region body
PF: predicated region fallthrough
CT: control target
= control target key end

     0   :  { %s797_s15 = smov 0   ;;  %s931_s0 = inlined_call_operand.vmem [shape: bf16[2,80,8], index: 0, kind: input, shape index: {}]   ;;  %s932_s1 = inlined_call_operand.vmem [shape: bf16[16,128], index: 1, kind: input, shape index: {}]   ;;  %s933_s2 = inlined_call_operand.vmem [shape: f32[1,128], index: 2, kind: input, shape index: {}]   ;;  %s934_s3 = inlined_call_operand.vmem [shape: f32[1,128], index: 3, kind: input, shape index: {}]   ;;  %s935_s4 = inlined_call_operand.vmem [shape: bf16[2,79,128], index: 4, kind: output, shape index: {}]  }
   0x1 LB: > { %s658_s16 = sadd.s32 4294967295, %s769_s15   ;;  %p662_p0 = scmp.ge.s32.totalorder %s769_s15, 1  ;;  %s769_s15 = sphi %s797_s15, %s14_s15  }
   0x2   : > { %p162_p1 = scmp.lt.s32.totalorder %s769_s15, 3 }
   0x4   : > { %p163_p2 = pnand %p662_p0, %p162_p1 }
   0x5   : > { %p188_p3 = scmp.lt.s32.totalorder (!%p163_p2), %s658_s16, 1 }
   0x6   : > { %166 = sbr.rel (%p163_p2) target bundleno = 316 (0x13c), region = 36 }
   0xb   : > { %v209_v0 = vld [vmem:[%s932_s1] sm:$0xf]  ;;  %vm292_vm0 = vcmask 1043456   ;;  %v210_v2 = vld [vmem:[%s932_s1 + $0x4] sm:$0xf]  ;;  %s937_s16 = smov (!%p188_p3, %s658_s16), 1 }
   0xc   : > { %v341_v1 = vsel %vm292_vm0, %v209_v0, 0  ;;  %v294_v3 = vsel %vm292_vm0, %v210_v2, 0  ;;  %s727_s21 = smul.u32 40, %s937_s16  ;;  %vm276_vm1 = vcmask 64512   ;;  %vm236_vm2 = vsmask.f32 7424 }
   0xd   : > { %350 = vmatpush.bf16.msra.mxu1 %v341_v1  ;;  %726 = vmatpush.bf16.msra.mxu3 %v341_v1  ;;  %v771_v56 = vmov 79.0   ;;  %vm385_vm3 = vcmask 1046528   ;;  %vm598_vm8 = vsmask.f32 3328 }
   0xe   : > { %303 = vmatpush.bf16.msra.mxu0 %v294_v3  ;;  %725 = vmatpush.bf16.msra.mxu2 %v294_v3  ;;  %s192_s24 = scalar_lea.vmem %s931_s0, %s727_s21  ;;  %739 = vrcp.f32 %v771_v56  ;;  %s910_s5 = scalar_lea.vmem %s935_s4, %s727_s21  ;;  %vm599_vm9 = vmand %vm292_vm0, %vm598_vm8 }
   0xf   : > { %v697_v4 = vld [vmem:[%s192_s24] sm:$0xff]  ;;  %v698_v5 = vld [vmem:[%s192_s24 + $0x8] sm:$0xff]  ;;  %v700_v6 = vld [vmem:[%s192_s24 + $0x18] sm:$0xff] }
  0x10   : > { %v701_v7 = vld [vmem:[%s192_s24 + $0x20] sm:$0xff]  ;;  %v240_v8 = vshll.u32 %v697_v4, 16  ;;  %690 = vmatmul.msk.bf16.vlgmr.msra.gmra.mxu1 %vm276_vm1, %v697_v4  ;;  %v238_v9 = vshrl.u32 %v697_v4, 16  ;;  %v245_v10 = vshll.u32 %v698_v5, 16  ;;  %v261_v11 = vshll.u32 %v700_v6, 16  ;;  %693 = vmatmul.msk.bf16.vlgmr.msra.gmra.mxu3 %vm276_vm1, %v700_v6  ;;  %v699_v22 = vld [vmem:[%s192_s24 + $0x10] sm:$0xff] }
  0x11   : > { %v265_v12 = vshrl.u32 %v700_v6, 16  ;;  %v269_v13 = vshll.u32 %v701_v7, 16  ;;  %v249_v23 = vshrl.u32 %v698_v5, 16  ;;  %v253_v24 = vshll.u32 %v699_v22, 16 }
  0x12   : > { %v242_v14 = vrot.slane %v240_v8, 1  ;;  %v247_v15 = vrot.slane %v245_v10, 1  ;;  %v263_v16 = vrot.slane %v261_v11, 1  ;;  %v273_v25 = vshrl.u32 %v701_v7, 16 }
  0x13   : > { %v271_v17 = vrot.slane %v269_v13, 1  ;;  %v255_v27 = vrot.slane %v253_v24, 1  ;;  %v257_v30 = vshrl.u32 %v699_v22, 16 }
  0x14   : > { %v243_v18 = vor.u32 %v242_v14, %v238_v9  ;;  %v267_v19 = vor.u32 %v265_v12, %v263_v16  ;;  %v251_v26 = vor.u32 %v249_v23, %v247_v15  ;;  %v740_v62 = vpop.eup %739 }
  0x15   : > { %v275_v28 = vor.u32 %v273_v25, %v271_v17  ;;  %v259_v31 = vor.u32 %v257_v30, %v255_v27  ;;  %v395_v6 = vmul.f32 79.0, %v740_v62  ;;  %vm399_vm4 = vweird.f32 %v740_v62 }
  0x16   : > { %v248_v20 = vsel %vm236_vm2, %v243_v18, %v247_v15  ;;  %v272_v21 = vsel %vm236_vm2, %v267_v19, %v271_v17  ;;  %v256_v29 = vsel %vm236_vm2, %v251_v26, %v255_v27 }
  0x17   : > { %685 = vmatmul.msk.bf16.vlgmr.msra.gmra.mxu0 %vm276_vm1, %v248_v20  ;;  %688 = vmatmul.msk.bf16.vlgmr.msra.gmra.mxu2 %vm276_vm1, %v272_v21  ;;  %v264_v32 = vsel %vm236_vm2, %v259_v31, %v263_v16  ;;  %v396_v11 = vsub.f32 1.0, %v395_v6 }
  0x19   : > { %v397_v14 = vmul.f32 %v740_v62, %v396_v11 }
  0x1b   : > { %v398_v17 = vadd.f32 %v740_v62, %v397_v14 }
  0x1d   : > { %v400_v20 = vsel %vm399_vm4, %v740_v62, %v398_v17 }
  0x20   : > { %691 = vmatmul.msk.bf16.gmra.mxu1 %vm276_vm1, %v698_v5  ;;  %694 = vmatmul.msk.bf16.gmra.mxu3 %vm276_vm1, %v701_v7 }
  0x27   : > { %686 = vmatmul.msk.bf16.gmra.mxu0 %vm276_vm1, %v256_v29  ;;  %689 = vmatmul.msk.bf16.gmra.mxu2 %vm276_vm1, %v275_v28 }
  0x30   : > { %692 = vmatmul.msk.bf16.gmra.mxu1 %vm276_vm1, %v699_v22 }
  0x37   : > { %687 = vmatmul.msk.bf16.gmra.mxu0 %vm276_vm1, %v264_v32 }
  0x8d   : > { %v352_v33 = vpop.f32.mrf.mxu1 }
  0x93   : > { %v367_v39 = vpop.f32.mrf.mxu3 }
  0x94   : > { %v305_v34 = vpop.f32.mrf.mxu0 }
  0x95   : > { %v354_v35 = vpop.f32.mrf.mxu1  ;;  %v353_v48 = vadd.f32 %v352_v33, %v305_v34 }
  0x9a   : > { %v320_v38 = vpop.f32.mrf.mxu2 }
  0x9b   : > { %v369_v43 = vpop.f32.mrf.mxu3  ;;  %v368_v63 = vadd.f32 %v367_v39, %v320_v38 }
  0x9c   : > { %v307_v36 = vpop.f32.mrf.mxu0 }
  0x9d   : > { %v357_v37 = vpop.f32.mrf.mxu1  ;;  %v355_v46 = vadd.f32 %v354_v35, %v307_v36 }
  0x9f   : > { %v377_v52 = vadd.f32 %v355_v46, %v353_v48 }
  0xa2   : > { %v322_v42 = vpop.f32.mrf.mxu2 }
  0xa3   : > { %v372_v51 = vpop.f32.mrf.mxu3  ;;  %v370_v3 = vadd.f32 %v369_v43, %v322_v42 }
  0xa4   : > { %v310_v40 = vpop.f32.mrf.mxu0 }
  0xa5   : > { %v359_v41 = vpop.f32.mrf.mxu1  ;;  %v358_v49 = vadd.f32 %v357_v37, %v310_v40 }
  0xa7   : > { %v378_v54 = vadd.f32 %v377_v52, %v358_v49 }
  0xaa   : > { %v325_v50 = vpop.f32.mrf.mxu2 }
  0xab   : > { %v374_v1 = vpop.f32.mrf.mxu3  ;;  %v373_v7 = vadd.f32 %v372_v51, %v325_v50 }
  0xac   : > { %v312_v44 = vpop.f32.mrf.mxu0 }
  0xad   : > { %v362_v45 = vpop.f32.mrf.mxu1  ;;  %v360_v53 = vadd.f32 %v359_v41, %v312_v44 }
  0xaf   : > { %v379_v57 = vadd.f32 %v378_v54, %v360_v53 }
  0xb2   : > { %v327_v0 = vpop.f32.mrf.mxu2 }
  0xb3   : > { %v375_v5 = vadd.f32 %v374_v1, %v327_v0 }
  0xb4   : > { %v315_v47 = vpop.f32.mrf.mxu0 }
  0xb5   : > { %v363_v55 = vadd.f32 %v362_v45, %v315_v47  ;;  %v364_v58 = vpop.f32.mrf.mxu1  ;;  %v386_v10 = vsel %vm385_vm3, %v375_v5, 0.0 }
  0xb7   : > { %v380_v60 = vadd.f32 %v379_v57, %v363_v55 }
  0xbc   : > { %v317_v59 = vpop.f32.mrf.mxu0 }
  0xbd   : > { %v365_v61 = vadd.f32 %v364_v58, %v317_v59 }
  0xbf   : > { %v381_v2 = vadd.f32 %v380_v60, %v365_v61 }
  0xc1   : > { %v382_v4 = vadd.f32 %v381_v2, %v368_v63 }
  0xc3   : > { %v383_v8 = vadd.f32 %v382_v4, %v370_v3 }
  0xc5   : > { %v384_v9 = vadd.f32 %v383_v8, %v373_v7 }
  0xc7   : > { %v387_v12 = vadd.f32 %v386_v10, %v384_v9 }
  0xc9   : > { %v388_v13 = vrot.slane %v387_v12, 4 }
  0xcb   : > { %v389_v15 = vadd.f32 %v388_v13, %v387_v12  ;;  %v738_v13 = vld [vmem:[%s934_s3] ss:$0 sm:$0xff] }
  0xcd   : > { %v390_v16 = vrot.slane %v389_v15, 2 }
  0xcf   : > { %v391_v18 = vadd.f32 %v390_v16, %v389_v15 }
  0xd1   : > { %v392_v19 = vrot.slane %v391_v18, 1 }
  0xd3   : > { %v393_v21 = vadd.f32 %v392_v19, %v391_v18 }
  0xd5   : > { %v401_v22 = vmul.f32 %v400_v20, %v393_v21 }
  0xd7   : > { %v402_v23 = vsub.f32 %v353_v48, %v401_v22  ;;  %v403_v24 = vsub.f32 %v355_v46, %v401_v22  ;;  %v404_v25 = vsub.f32 %v358_v49, %v401_v22  ;;  %v405_v28 = vsub.f32 %v360_v53, %v401_v22 }
  0xd8   : > { %v406_v29 = vsub.f32 %v363_v55, %v401_v22  ;;  %v407_v32 = vsub.f32 %v365_v61, %v401_v22  ;;  %v408_v35 = vsub.f32 %v368_v63, %v401_v22  ;;  %v409_v38 = vsub.f32 %v370_v3, %v401_v22  ;;  %v737_v3 = vld [vmem:[%s933_s2] ss:$0 sm:$0xff] }
  0xd9   : > { %v412_v26 = vmul.f32 %v402_v23, %v402_v23  ;;  %v413_v27 = vmul.f32 %v403_v24, %v403_v24  ;;  %v414_v30 = vmul.f32 %v404_v25, %v404_v25  ;;  %v415_v33 = vmul.f32 %v405_v28, %v405_v28 }
  0xda   : > { %v416_v36 = vmul.f32 %v406_v29, %v406_v29  ;;  %v417_v39 = vmul.f32 %v407_v32, %v407_v32  ;;  %v411_v41 = vsub.f32 %v375_v5, %v401_v22  ;;  %v410_v42 = vsub.f32 %v373_v7, %v401_v22 }
  0xdb   : > { %v422_v31 = vadd.f32 %v413_v27, %v412_v26  ;;  %v418_v43 = vmul.f32 %v408_v35, %v408_v35  ;;  %v419_v45 = vmul.f32 %v409_v38, %v409_v38 }
  0xdc   : > { %v421_v47 = vmul.f32 %v411_v41, %v411_v41  ;;  %v420_v48 = vmul.f32 %v410_v42, %v410_v42 }
  0xdd   : > { %v423_v34 = vadd.f32 %v422_v31, %v414_v30 }
  0xde   : > { %v430_v51 = vsel %vm385_vm3, %v421_v47, 0.0 }
  0xdf   : > { %v424_v37 = vadd.f32 %v423_v34, %v415_v33 }
  0xe1   : > { %v425_v40 = vadd.f32 %v424_v37, %v416_v36 }
  0xe3   : > { %v426_v44 = vadd.f32 %v425_v40, %v417_v39 }
  0xe5   : > { %v427_v46 = vadd.f32 %v426_v44, %v418_v43 }
  0xe7   : > { %v428_v49 = vadd.f32 %v427_v46, %v419_v45 }
  0xe9   : > { %v429_v50 = vadd.f32 %v428_v49, %v420_v48 }
  0xeb   : > { %v431_v52 = vadd.f32 %v430_v51, %v429_v50 }
  0xed   : > { %v432_v53 = vrot.slane %v431_v52, 4 }
  0xef   : > { %v433_v54 = vadd.f32 %v432_v53, %v431_v52 }
  0xf1   : > { %v434_v55 = vrot.slane %v433_v54, 2 }
  0xf3   : > { %v435_v56 = vadd.f32 %v434_v55, %v433_v54 }
  0xf5   : > { %v436_v57 = vrot.slane %v435_v56, 1 }
  0xf7   : > { %v437_v58 = vadd.f32 %v436_v57, %v435_v56 }
  0xf9   : > { %v438_v59 = vmul.f32 %v437_v58, %v400_v20 }
  0xfb   : > { %v439_v60 = vadd.f32 1e-05, %v438_v59 }
  0xfd   : > { %741 = vrsqrt.f32 %v439_v60  ;;  %vm446_vm6 = vweird.f32 %v439_v60 }
 0x103   : > { %v742_v61 = vpop.eup %741 }
 0x104   : > { %v441_v62 = vmul.f32 %v742_v61, %v439_v60  ;;  %vm447_vm5 = vweird.f32 %v742_v61 }
 0x105   : > { %vm448_vm7 = vmor %vm446_vm6, %vm447_vm5 }
 0x106   : > { %v442_v63 = vmul.f32 %v742_v61, %v441_v62 }
 0x108   : > { %v443_v0 = vmul.f32 0.5, %v442_v63 }
 0x10a   : > { %v444_v1 = vsub.f32 1.5, %v443_v0 }
 0x10c   : > { %v445_v2 = vmul.f32 %v742_v61, %v444_v1 }
 0x10e   : > { %v449_v4 = vsel %vm448_vm7, %v742_v61, %v445_v2 }
 0x10f   : > { %v450_v5 = vmul.f32 %v449_v4, %v402_v23  ;;  %v451_v6 = vmul.f32 %v449_v4, %v403_v24  ;;  %v452_v7 = vmul.f32 %v449_v4, %v404_v25  ;;  %v453_v8 = vmul.f32 %v449_v4, %v405_v28 }
 0x110   : > { %v454_v9 = vmul.f32 %v449_v4, %v406_v29  ;;  %v455_v10 = vmul.f32 %v449_v4, %v407_v32  ;;  %v456_v11 = vmul.f32 %v449_v4, %v408_v35  ;;  %v457_v12 = vmul.f32 %v449_v4, %v409_v38 }
 0x111   : > { %v458_v14 = vmul.f32 %v449_v4, %v410_v42  ;;  %v459_v15 = vmul.f32 %v449_v4, %v411_v41  ;;  %v464_v16 = vmul.f32 %v737_v3, %v450_v5  ;;  %v465_v17 = vmul.f32 %v737_v3, %v451_v6 }
 0x112   : > { %v466_v18 = vmul.f32 %v737_v3, %v452_v7  ;;  %v467_v19 = vmul.f32 %v737_v3, %v453_v8  ;;  %v468_v20 = vmul.f32 %v737_v3, %v454_v9  ;;  %v469_v21 = vmul.f32 %v737_v3, %v455_v10 }
 0x113   : > { %v470_v22 = vmul.f32 %v737_v3, %v456_v11  ;;  %v471_v23 = vmul.f32 %v737_v3, %v457_v12  ;;  %v472_v24 = vmul.f32 %v737_v3, %v458_v14  ;;  %v473_v25 = vmul.f32 %v737_v3, %v459_v15 }
 0x114   : > { %v843_v26 = vadd.f32 %v738_v13, %v464_v16  ;;  %v845_v27 = vadd.f32 %v738_v13, %v465_v17  ;;  %v847_v28 = vadd.f32 %v738_v13, %v466_v18  ;;  %v849_v29 = vadd.f32 %v738_v13, %v467_v19 }
 0x115   : > { %v851_v30 = vadd.f32 %v738_v13, %v468_v20  ;;  %v853_v31 = vadd.f32 %v738_v13, %v469_v21  ;;  %v855_v32 = vadd.f32 %v738_v13, %v470_v22  ;;  %v857_v33 = vadd.f32 %v738_v13, %v471_v23 }
 0x116   : > { %v859_v34 = vadd.f32 %v738_v13, %v472_v24  ;;  %v861_v35 = vadd.f32 %v738_v13, %v473_v25  ;;  %v488_v36 = vmul.f32 %v843_v26, %v843_v26  ;;  %v489_v37 = vmul.f32 %v845_v27, %v845_v27 }
 0x117   : > { %v490_v38 = vmul.f32 %v847_v28, %v847_v28  ;;  %v491_v39 = vmul.f32 %v849_v29, %v849_v29  ;;  %v492_v40 = vmul.f32 %v851_v30, %v851_v30  ;;  %v493_v41 = vmul.f32 %v853_v31, %v853_v31 }
 0x118   : > { %v494_v42 = vmul.f32 %v855_v32, %v855_v32  ;;  %v495_v43 = vmul.f32 %v857_v33, %v857_v33  ;;  %v496_v44 = vmul.f32 %v859_v34, %v859_v34  ;;  %v497_v45 = vmul.f32 %v861_v35, %v861_v35 }
 0x119   : > { %v498_v46 = vmul.f32 %v488_v36, %v843_v26  ;;  %v499_v47 = vmul.f32 %v489_v37, %v845_v27  ;;  %v500_v48 = vmul.f32 %v490_v38, %v847_v28  ;;  %v501_v49 = vmul.f32 %v491_v39, %v849_v29 }
 0x11a   : > { %v502_v50 = vmul.f32 %v492_v40, %v851_v30  ;;  %v503_v51 = vmul.f32 %v493_v41, %v853_v31  ;;  %v504_v52 = vmul.f32 %v494_v42, %v855_v32  ;;  %v505_v53 = vmul.f32 %v495_v43, %v857_v33 }
 0x11b   : > { %v506_v54 = vmul.f32 %v496_v44, %v859_v34  ;;  %v507_v55 = vmul.f32 %v497_v45, %v861_v35  ;;  %v508_v56 = vmul.f32 0.044715, %v498_v46  ;;  %v509_v57 = vmul.f32 0.044715, %v499_v47 }
 0x11c   : > { %v510_v58 = vmul.f32 0.044715, %v500_v48  ;;  %v511_v59 = vmul.f32 0.044715, %v501_v49  ;;  %v512_v60 = vmul.f32 0.044715, %v502_v50 }
 0x11d   : > { %v513_v61 = vmul.f32 0.044715, %v503_v51  ;;  %v514_v62 = vmul.f32 0.044715, %v504_v52  ;;  %v515_v63 = vmul.f32 0.044715, %v505_v53  ;;  %v518_v0 = vadd.f32 %v508_v56, %v843_v26 }
 0x11e   : > { %v516_v1 = vmul.f32 0.044715, %v506_v54  ;;  %v519_v2 = vadd.f32 %v509_v57, %v845_v27  ;;  %v520_v3 = vadd.f32 %v510_v58, %v847_v28  ;;  %v517_v4 = vmul.f32 0.044715, %v507_v55 }
 0x11f   : > { %v521_v5 = vadd.f32 %v511_v59, %v849_v29  ;;  %v522_v6 = vadd.f32 %v512_v60, %v851_v30  ;;  %v523_v7 = vadd.f32 %v513_v61, %v853_v31  ;;  %v524_v8 = vadd.f32 %v514_v62, %v855_v32 }
 0x120   : > { %v528_v9 = vmul.f32 0.7978846, %v518_v0  ;;  %v525_v10 = vadd.f32 %v515_v63, %v857_v33  ;;  %v529_v11 = vmul.f32 0.7978846, %v519_v2  ;;  %v530_v12 = vmul.f32 0.7978846, %v520_v3 }
 0x121   : > { %v531_v13 = vmul.f32 0.7978846, %v521_v5  ;;  %v526_v14 = vadd.f32 %v516_v1, %v859_v34  ;;  %v532_v15 = vmul.f32 0.7978846, %v522_v6  ;;  %v527_v16 = vadd.f32 %v517_v4, %v861_v35 }
 0x122   : > { %743 = vtanh.f32 %v528_v9  ;;  %v533_v17 = vmul.f32 0.7978846, %v523_v7  ;;  %v534_v18 = vmul.f32 0.7978846, %v524_v8  ;;  %v535_v19 = vmul.f32 0.7978846, %v525_v10 }
 0x123   : > { %745 = vtanh.f32 %v529_v11  ;;  %v536_v20 = vmul.f32 0.7978846, %v526_v14  ;;  %v537_v21 = vmul.f32 0.7978846, %v527_v16  ;;  %v600_v7 = vld [vmem:[%s910_s5 + $0x24] sm:$0xf] }
 0x124   : > { %747 = vtanh.f32 %v530_v12 }
 0x125   : > { %749 = vtanh.f32 %v531_v13 }
 0x126   : > { %751 = vtanh.f32 %v532_v15 }
 0x127   : > { %753 = vtanh.f32 %v533_v17 }
 0x128   : > { %v744_v22 = vpop.eup %743  ;;  %755 = vtanh.f32 %v534_v18 }
 0x129   : > { %v746_v23 = vpop.eup %745  ;;  %757 = vtanh.f32 %v535_v19  ;;  %v548_v24 = vadd.f32 1.0, %v744_v22 }
 0x12a   : > { %v748_v25 = vpop.eup %747  ;;  %759 = vtanh.f32 %v536_v20  ;;  %v549_v36 = vadd.f32 1.0, %v746_v23 }
 0x12b   : > { %v750_v37 = vpop.eup %749  ;;  %761 = vtanh.f32 %v537_v21  ;;  %v550_v38 = vadd.f32 1.0, %v748_v25  ;;  %v558_v39 = vmul.f32 0.5, %v548_v24 }
 0x12c   : > { %v752_v40 = vpop.eup %751  ;;  %v551_v41 = vadd.f32 1.0, %v750_v37  ;;  %v559_v42 = vmul.f32 0.5, %v549_v36 }
 0x12d   : > { %v754_v43 = vpop.eup %753  ;;  %v552_v44 = vadd.f32 1.0, %v752_v40  ;;  %v560_v45 = vmul.f32 0.5, %v550_v38  ;;  %v568_v46 = vmul.f32 %v558_v39, %v843_v26 }
 0x12e   : > { %v756_v47 = vpop.eup %755  ;;  %v553_v48 = vadd.f32 1.0, %v754_v43  ;;  %v561_v49 = vmul.f32 0.5, %v551_v41  ;;  %v569_v50 = vmul.f32 %v559_v42, %v845_v27 }
 0x12f   : > { %v758_v51 = vpop.eup %757  ;;  %v554_v52 = vadd.f32 1.0, %v756_v47  ;;  %v562_v53 = vmul.f32 0.5, %v552_v44  ;;  %v570_v54 = vmul.f32 %v560_v45, %v847_v28 }
 0x130   : > { %v760_v55 = vpop.eup %759  ;;  %v555_v56 = vadd.f32 1.0, %v758_v51  ;;  %v563_v26 = vmul.f32 0.5, %v553_v48  ;;  %v571_v57 = vmul.f32 %v561_v49, %v849_v29  ;;  %v705_v58 = vpack.c.bf16 %v569_v50, %v568_v46 }
 0x131   : > { %v762_v27 = vpop.eup %761  ;;  %v556_v59 = vadd.f32 1.0, %v760_v55  ;;  %v564_v60 = vmul.f32 0.5, %v554_v52  ;;  %v572_v61 = vmul.f32 %v562_v53, %v851_v30 }
 0x132   : > { %v557_v62 = vadd.f32 1.0, %v762_v27  ;;  %v565_v63 = vmul.f32 0.5, %v555_v56  ;;  %v573_v0 = vmul.f32 %v563_v26, %v853_v31  ;;  %706 = vst [vmem:[%s910_s5] sm:$0xff] %v705_v58   ;;  %v710_v28 = vpack.c.bf16 %v571_v57, %v570_v54 }
 0x133   : > { %v566_v1 = vmul.f32 0.5, %v556_v59  ;;  %v574_v29 = vmul.f32 %v564_v60, %v855_v32 }
 0x134   : > { %v567_v2 = vmul.f32 0.5, %v557_v62  ;;  %v575_v3 = vmul.f32 %v565_v63, %v857_v33  ;;  %722 = vst [vmem:[%s910_s5 + $0x8] sm:$0xff] %v710_v28   ;;  %v715_v4 = vpack.c.bf16 %v573_v0, %v572_v61 }
 0x135   : > { %v576_v30 = vmul.f32 %v566_v1, %v859_v34 }
 0x136   : > { %v577_v5 = vmul.f32 %v567_v2, %v861_v35  ;;  %723 = vst [vmem:[%s910_s5 + $0x10] sm:$0xff] %v715_v4   ;;  %v720_v31 = vpack.c.bf16 %v575_v3, %v574_v29 }
 0x137   : > { %v586_v6 = vpack.c.bf16 %v576_v30, %v576_v30 }
 0x138   : > { %v587_v8 = vpack.c.bf16 %v577_v5, %v577_v5  ;;  %724 = vst [vmem:[%s910_s5 + $0x18] sm:$0xff] %v720_v31  }
 0x139   : > { %596 = vst [vmem:[%s910_s5 + $0x20] sm:$0xf] %v586_v6 }
 0x13a   : > { %v601_v32 = vsel %vm599_vm9, %v587_v8, %v600_v7 }
 0x13b   : > { %602 = vst [vmem:[%s910_s5 + $0x24] sm:$0xf] %v601_v32 }
 0x13c PF: > { %s14_s15 = sadd.s32 1, %s769_s15  }
 0x13d   : > { %p11_p4 = scmp.ge.s32.totalorder %s14_s15, 4  }
 0x13f   :  { %13 = sbr.rel (!%p11_p4) target bundleno = 1 (0x1), region = 66 }

</bundles_post_ra>
